<compile_context>
chip_gen: v5e
topology: v5e:2x2
jax: 0.10.0
libtpu: 0.0.40
codegen_flags: <defaults>
</compile_context>

<pallas_src>
import functools

import numpy as np
import jax
import jax.numpy as jnp
from jax.experimental import pallas as pl
from jax.experimental.pallas import tpu as pltpu

_LANE = 128


def _round_up(x, m):
    return ((x + m - 1) // m) * m


def _vmem_capacity_bytes():
    # Generation-aware VMEM capacity (64 MiB/TC on v7x, 128 MiB on v5e/v6e).
    try:
        return int(pltpu.get_tpu_info().vmem_capacity_bytes)
    except Exception:
        return 64 << 20  # conservative fallback (v7x per-TensorCore VMEM)


def _choose_batch_tile(b, n_pad, itemsize, budget_bytes):
    # Sublane-pack-aware row multiple: 8 for f32, 16 for bf16/f16, 32 for int8.
    row_mult = max(8, 32 // max(itemsize, 1))
    # Double-buffered p+q stream plus ~4 KiB/row of in-kernel temporaries
    # (per-chunk d/hi/lo/c buffers + the (TB,128) f32 sq accumulator) which do
    # not scale with N.
    per_row = 2 * 2 * n_pad * itemsize + 4096
    tb = budget_bytes // per_row
    tb = min(4096, (tb // row_mult) * row_mult)
    tb = max(row_mult, tb)
    tb = min(tb, _round_up(b, row_mult))
    return int(tb)


def _emd_partial_kernel(p_ref, q_ref, out_ref, *, n_valid, split_f32):
    """Partial sum of (cumsum(p) - cumsum(q))^2 over one (TB, Npad) batch tile."""
    tb, n_pad = p_ref.shape
    n_chunks = n_pad // _LANE
    rem = n_valid % _LANE  # valid lanes in the last chunk (0 => all 128 valid)

    # 128x128 upper-triangular ones: tri[k, j] = 1 iff k <= j (exact in bf16).
    # Built on-chip every grid step; negligible VPU work, zero HBM traffic.
    row = jax.lax.broadcasted_iota(jnp.int32, (_LANE, _LANE), 0)
    col = jax.lax.broadcasted_iota(jnp.int32, (_LANE, _LANE), 1)
    tri = (row <= col).astype(jnp.bfloat16)

    carry = jnp.zeros((tb, 1), jnp.float32)    # running cumsum from previous chunks
    sq = jnp.zeros((tb, _LANE), jnp.float32)   # elementwise accumulator of c^2

    # TODO(synk): switch this static unroll to lax.fori_loop for very large N
    # (N >= ~16K chunks of 128) to bound code size.
    for j in range(n_chunks):
        sl = slice(j * _LANE, (j + 1) * _LANE)
        d = p_ref[:, sl].astype(jnp.float32) - q_ref[:, sl].astype(jnp.float32)
        if split_f32:
            # hi/lo bf16 split: native bf16 MXU rate with ~f32 accuracy
            # (tri is exact in bf16, so only d's representation error remains).
            d_hi = d.astype(jnp.bfloat16)
            d_lo = (d - d_hi.astype(jnp.float32)).astype(jnp.bfloat16)
            c = jnp.dot(d_hi, tri, preferred_element_type=jnp.float32)
            c = c + jnp.dot(d_lo, tri, preferred_element_type=jnp.float32)
        else:
            c = jnp.dot(d.astype(jnp.bfloat16), tri,
                        preferred_element_type=jnp.float32)
        c = c + carry                       # add prefix carried in from earlier chunks
        carry = c[:, _LANE - 1:_LANE]       # inclusive prefix -> carry for next chunk
        if rem != 0 and j == n_chunks - 1:
            lane = jax.lax.broadcasted_iota(jnp.int32, (1, _LANE), 1)
            sq = sq + jnp.where(lane < rem, c * c, 0.0)   # mask padded tail lanes
        else:
            sq = sq + c * c

    total = jnp.sum(sq)
    out_ref[...] = jnp.broadcast_to(total, out_ref.shape).astype(jnp.float32)


def emd_loss(p: jax.Array, q: jax.Array, scaling_factor: float) -> jax.Array:
    assert p.shape == q.shape, "Shape of the two distribution batches must be the same."
    assert p.ndim == 2, "This kernel handles (batch, N) distribution batches."
    b, n = p.shape

    # Promote to a single supported floating dtype (handles mixed-dtype callers).
    dtype = np.dtype(jnp.promote_types(p.dtype, q.dtype))
    if dtype.name not in ("float32", "bfloat16", "float16"):
        dtype = np.dtype(jnp.float32)
    itemsize = dtype.itemsize
    split_f32 = itemsize >= 4
    if p.dtype != dtype:
        p = p.astype(dtype)
    if q.dtype != dtype:
        q = q.astype(dtype)

    # Pad the lane axis to a multiple of 128; tail lanes are masked in-kernel.
    n_pad = _round_up(n, _LANE)

    # Generation-aware VMEM budget: ~48 MiB on v7x, ~64 MiB on v5e/v6e.
    vmem_ceiling = max(32 << 20, min(_vmem_capacity_bytes() - (16 << 20), 64 << 20))
    tb = _choose_batch_tile(b, n_pad, itemsize, vmem_ceiling - (2 << 20))
    b_pad = _round_up(b, tb)

    if (b_pad, n_pad) != (b, n):
        # Zero rows/lanes contribute exactly 0 to the (masked) partial sums.
        p = jnp.pad(p, ((0, b_pad - b), (0, n_pad - n)))
        q = jnp.pad(q, ((0, b_pad - b), (0, n_pad - n)))
    num_tiles = b_pad // tb

    vmem_need = (2 * 2 * tb * n_pad * itemsize   # p, q double-buffered
                 + 2 * 8 * _LANE * 4             # output tile double-buffered
                 + tb * 4096                     # in-kernel temporaries
                 + (2 << 20))                    # slack
    vmem_limit = int(min(vmem_ceiling, max(32 << 20, vmem_need)))

    kernel = functools.partial(_emd_partial_kernel, n_valid=n, split_f32=split_f32)

    partial_tiles = pl.pallas_call(
        kernel,
        out_shape=jax.ShapeDtypeStruct((num_tiles, 8, _LANE), jnp.float32),
        grid_spec=pltpu.PrefetchScalarGridSpec(
            num_scalar_prefetch=0,
            grid=(num_tiles,),
            in_specs=[
                pl.BlockSpec((tb, n_pad), lambda i: (i, 0)),   # p batch tile
                pl.BlockSpec((tb, n_pad), lambda i: (i, 0)),   # q batch tile
            ],
            out_specs=pl.BlockSpec((1, 8, _LANE), lambda i: (i, 0, 0)),
        ),
        compiler_params=pltpu.CompilerParams(
            dimension_semantics=("parallel",),
            vmem_limit_bytes=vmem_limit,
        ),
    )(p, q)

    # Each tile's total is broadcast over its (8, 128) slab; take one element
    # per tile, sum, and normalise with the ORIGINAL batch size and N.
    partials = partial_tiles[:, 0, 0]
    return jnp.sum(partials) * (float(scaling_factor) / (n * b))


def emd_loss_ref(p, q, scaling_factor):
    # Pure-JAX reference mirroring the PyTorch module.
    c = jnp.cumsum(p, axis=-1) - jnp.cumsum(q, axis=-1)
    per_batch = jnp.mean(jnp.square(c), axis=-1)
    return jnp.sum(per_batch) / p.shape[0] * scaling_factor


if __name__ == "__main__":
    B, N = 8, 128
    scaling = 2.5

    key = jax.random.PRNGKey(0)
    kp, kq = jax.random.split(key)
    # Distribution-like inputs (softmax-normalized along last dim).
    p = jax.nn.softmax(jax.random.normal(kp, (B, N), dtype=jnp.float32), axis=-1)
    q = jax.nn.softmax(jax.random.normal(kq, (B, N), dtype=jnp.float32), axis=-1)

    out = jax.block_until_ready(emd_loss(p, q, scaling))
    ref = emd_loss_ref(p, q, scaling)

    # The hi/lo bf16 MXU path tracks the f32 reference to ~1e-6 absolute here.
    assert jnp.allclose(out, ref, rtol=5e-5, atol=1e-6), (out, ref)

    print("KERNEL_OK")
</pallas_src>

<mosaic_0001>
module attributes {stable_mosaic.version = 11 : i64} {
  func.func @_emd_partial_kernel(%arg0: i32, %arg1: memref<8x128xf32, #tpu.memory_space<vmem>>, %arg2: memref<8x128xf32, #tpu.memory_space<vmem>>, %arg3: memref<1x8x128xf32, #tpu.memory_space<vmem>>) attributes {dimension_semantics = [#tpu.dimension_semantics<parallel>], iteration_bounds = array<i64: 1>, scalar_prefetch = 0 : i64, scratch_operands = 0 : i64, tpu.core_type = #tpu.core_type<tc>, window_params = [{transform_indices = @transform_0, window_bounds = array<i64: 8, 128>}, {transform_indices = @transform_1, window_bounds = array<i64: 8, 128>}, {transform_indices = @transform_2, window_bounds = array<i64: 1, 8, 128>}]} {
    %0 = tpu.iota {dimensions = array<i32: 0>} : vector<128x128xi32>
    %1 = tpu.iota {dimensions = array<i32: 1>} : vector<128x128xi32>
    %2 = arith.cmpi sle, %0, %1 : vector<128x128xi32>
    %3 = arith.extui %2 : vector<128x128xi1> to vector<128x128xi32>
    %4 = arith.sitofp %3 : vector<128x128xi32> to vector<128x128xf32>
    %5 = arith.truncf %4 : vector<128x128xf32> to vector<128x128xbf16>
    %cst = arith.constant 0.000000e+00 : f32
    %6 = vector.broadcast %cst : f32 to vector<8x1xf32>
    %cst_0 = arith.constant 0.000000e+00 : f32
    %7 = vector.broadcast %cst_0 : f32 to vector<8x128xf32>
    %c0 = arith.constant 0 : index
    %c0_1 = arith.constant 0 : index
    %8 = vector.load %arg1[%c0, %c0_1] : memref<8x128xf32, #tpu.memory_space<vmem>>, vector<8x128xf32>
    %c0_2 = arith.constant 0 : index
    %c0_3 = arith.constant 0 : index
    %9 = vector.load %arg2[%c0_2, %c0_3] : memref<8x128xf32, #tpu.memory_space<vmem>>, vector<8x128xf32>
    %10 = arith.subf %8, %9 : vector<8x128xf32>
    %11 = arith.truncf %10 : vector<8x128xf32> to vector<8x128xbf16>
    %12 = arith.extf %11 : vector<8x128xbf16> to vector<8x128xf32>
    %13 = arith.subf %10, %12 : vector<8x128xf32>
    %14 = arith.truncf %13 : vector<8x128xf32> to vector<8x128xbf16>
    %cst_4 = arith.constant dense<0.000000e+00> : vector<8x128xf32>
    %15 = tpu.matmul %11, %5, %cst_4 {dimension_numbers = #tpu.dot_dimension_numbers<[1], [0], [0], [1], [0, 0, 1, 1], [], []>} : vector<8x128xbf16>, vector<128x128xbf16>, vector<8x128xf32> -> vector<8x128xf32>
    %cst_5 = arith.constant dense<0.000000e+00> : vector<8x128xf32>
    %16 = tpu.matmul %14, %5, %cst_5 {dimension_numbers = #tpu.dot_dimension_numbers<[1], [0], [0], [1], [0, 0, 1, 1], [], []>} : vector<8x128xbf16>, vector<128x128xbf16>, vector<8x128xf32> -> vector<8x128xf32>
    %17 = arith.addf %15, %16 : vector<8x128xf32>
    %18 = vector.broadcast %6 : vector<8x1xf32> to vector<8x128xf32>
    %19 = arith.addf %17, %18 : vector<8x128xf32>
    %20 = arith.mulf %19, %19 : vector<8x128xf32>
    %21 = arith.addf %7, %20 : vector<8x128xf32>
    %22 = vector.shape_cast %21 : vector<8x128xf32> to vector<1x8x128xf32>
    %cst_6 = arith.constant dense<0.000000e+00> : vector<1xf32>
    %23 = vector.multi_reduction <add>, %22, %cst_6 [1, 2] : vector<1x8x128xf32> to vector<1xf32>
    %24 = vector.shape_cast %23 : vector<1xf32> to vector<1x1x1xf32>
    %25 = vector.extract %24[0, 0, 0] : f32 from vector<1x1x1xf32>
    %26 = vector.broadcast %25 : f32 to vector<1x8x128xf32>
    %c0_7 = arith.constant 0 : index
    %c0_8 = arith.constant 0 : index
    %c0_9 = arith.constant 0 : index
    %27 = vector.load %arg3[%c0_7, %c0_8, %c0_9] : memref<1x8x128xf32, #tpu.memory_space<vmem>>, vector<1x8x128xf32>
    tpu.vector_store %arg3[%c0_7, %c0_8, %c0_9], %26 {strides = array<i32>} : memref<1x8x128xf32, #tpu.memory_space<vmem>>, vector<1x8x128xf32>,
    return
  }
  func.func @transform_0(%arg0: i32) -> (i32, i32) {
    %c0_i32 = arith.constant 0 : i32
    %c0_i32_0 = arith.constant 0 : i32
    return %arg0, %c0_i32 : i32, i32
  }
  func.func @transform_1(%arg0: i32) -> (i32, i32) {
    %c0_i32 = arith.constant 0 : i32
    %c0_i32_0 = arith.constant 0 : i32
    return %arg0, %c0_i32 : i32, i32
  }
  func.func @transform_2(%arg0: i32) -> (i32, i32, i32) {
    %c0_i32 = arith.constant 0 : i32
    %c0_i32_0 = arith.constant 0 : i32
    %c0_i32_1 = arith.constant 0 : i32
    return %arg0, %c0_i32, %c0_i32_0 : i32, i32, i32
  }
}

</mosaic_0001>

<bundles_post_ra>
// kernel: tpu_custom_call.1
= control target key start
LH: loop header
LB: loop body
LE: loop exit
PB: predicated region body
PF: predicated region fallthrough
CT: control target
= control target key end

     0   :  { %7 = vsyncpa [#allocation3], 0  ;;  %s340_s0 = inlined_call_operand.hbm [shape: f32[8,128], index: 0, kind: input, shape index: {}]   ;;  %s341_s1 = inlined_call_operand.hbm [shape: f32[8,128], index: 1, kind: input, shape index: {}]   ;;  %s342_s2 = inlined_call_operand.hbm [shape: f32[1,8,128], index: 2, kind: output, shape index: {}]  }
   0x1   :  { %8 = vsyncpa [#allocation6], 0 }
   0x2   :  { %9 = vsyncpa [#allocation4], 0  ;;  %s15_s11 = sshll.u32 %s340_s0, 4  ;;  %s312_s12 = smov [#allocation2]   ;;  %s16_s11 = int_to_ptr.hbm [resolvable:$true] %s15_s11 }
   0x3   :  { %s17_s13 = sshll.u32 %s312_s12, 4  ;;  %s26_s16 = sshll.u32 %s341_s1, 4  ;;  %s18_s13 = int_to_ptr.vmem [resolvable:$true] %s17_s13  ;;  %s27_s16 = int_to_ptr.hbm [resolvable:$true] %s26_s16 }
   0x4   :  { %20 = dma.hbm_to_vmem [thread:$0]  %s16_s11, 128, %s18_s13, [#allocation3]  }
   0x5   :  { %s313_s17 = smov [#allocation5]  }
   0x6   :  { %s28_s18 = sshll.u32 %s313_s17, 4  ;;  %s29_s18 = int_to_ptr.vmem [resolvable:$true] %s28_s18 }
   0x7   :  { %31 = dma.hbm_to_vmem [thread:$0]  %s27_s16, 128, %s29_s18, [#allocation6]  }
   0x8   :  { %306 = dma.done.wait [#allocation3], 128  }
   0x9   :  { %307 = vsyncadd [#allocation3], 4294967168  ;;  %v40_v0 = vlaneseq }
   0xa   :  { %308 = dma.done.wait [#allocation6], 128  }
   0xb   :  { %309 = vsyncadd [#allocation6], 4294967168  ;;  %v41_v1 = vshrl.u32 %v40_v0, 7  ;;  %v58_v2 = vand.u32 127, %v40_v0  ;;  %v314_v9 = vmov 1.0|1.0  }
   0xc   :  { %v115_v14 = vld [vmem:[#allocation2] sm:$0xff]  ;;  %v116_v15 = vld [vmem:[#allocation5] sm:$0xff]  ;;  %s315_s0 = smov [#allocation7]   ;;  %s169_s21 = sshll.u32 %s342_s2, 4  ;;  %s170_s21 = int_to_ptr.hbm [resolvable:$true] %s169_s21 }
   0xd   :  { %v55_v3 = vadd.s32 112, %v41_v1  ;;  %v56_v4 = vadd.s32 120, %v41_v1  ;;  %v53_v5 = vadd.s32 96, %v41_v1  ;;  %v54_v6 = vadd.s32 104, %v41_v1  ;;  %s167_s1 = sshll.u32 %s315_s0, 4  ;;  %s168_s1 = int_to_ptr.vmem [resolvable:$true] %s167_s1 }
   0xe   :  { %v51_v7 = vadd.s32 80, %v41_v1  ;;  %v52_v8 = vadd.s32 88, %v41_v1  ;;  %v49_v10 = vadd.s32 64, %v41_v1  ;;  %v50_v11 = vadd.s32 72, %v41_v1 }
   0xf   :  { %vm73_vm0 = vcmp.le.s32.totalorder %v55_v3, %v58_v2  ;;  %vm74_vm1 = vcmp.le.s32.totalorder %v56_v4, %v58_v2  ;;  %vm71_vm2 = vcmp.le.s32.totalorder %v53_v5, %v58_v2  ;;  %vm72_vm3 = vcmp.le.s32.totalorder %v54_v6, %v58_v2 }
  0x10   :  { %vm196_vm4 = vmpackc.low %vm74_vm1, %vm73_vm0  ;;  %vm69_vm6 = vcmp.le.s32.totalorder %v51_v7, %v58_v2  ;;  %vm70_vm7 = vcmp.le.s32.totalorder %v52_v8, %v58_v2  ;;  %vm67_vm9 = vcmp.le.s32.totalorder %v49_v10, %v58_v2  ;;  %vm68_vm10 = vcmp.le.s32.totalorder %v50_v11, %v58_v2 }
  0x11   :  { %197 = vmatpush.bf16.msk.msra.mxu0 %vm196_vm4, %v314_v9  ;;  %213 = vmatpush.bf16.msk.msra.mxu1 %vm196_vm4, %v314_v9  ;;  %vm198_vm5 = vmpackc.low %vm72_vm3, %vm71_vm2  ;;  %v47_v12 = vadd.s32 48, %v41_v1  ;;  %v48_v13 = vadd.s32 56, %v41_v1  ;;  %v45_v16 = vadd.s32 32, %v41_v1  ;;  %v46_v17 = vadd.s32 40, %v41_v1 }
  0x12   :  { %vm200_vm8 = vmpackc.low %vm70_vm7, %vm69_vm6  ;;  %v117_v18 = vsub.f32 %v115_v14, %v116_v15  ;;  %v43_v19 = vadd.s32 16, %v41_v1  ;;  %v44_v20 = vadd.s32 24, %v41_v1  ;;  %v42_v22 = vadd.s32 8, %v41_v1 }
  0x13   :  { %vm202_vm11 = vmpackc.low %vm68_vm10, %vm67_vm9  ;;  %vm65_vm12 = vcmp.le.s32.totalorder %v47_v12, %v58_v2  ;;  %vm66_vm13 = vcmp.le.s32.totalorder %v48_v13, %v58_v2  ;;  %vm63_vm15 = vcmp.le.s32.totalorder %v45_v16, %v58_v2  ;;  %vm64_vm0 = vcmp.le.s32.totalorder %v46_v17, %v58_v2 }
  0x14   :  { %vm204_vm14 = vmpackc.low %vm66_vm13, %vm65_vm12  ;;  %v118_v21 = vpack.c.bf16 %v117_v18, %v117_v18  ;;  %vm61_vm2 = vcmp.le.s32.totalorder %v43_v19, %v58_v2  ;;  %vm62_vm3 = vcmp.le.s32.totalorder %v44_v20, %v58_v2  ;;  %vm60_vm6 = vcmp.le.s32.totalorder %v42_v22, %v58_v2 }
  0x15   :  { %199 = vmatpush.bf16.msk.msra.mxu0 %vm198_vm5, %v314_v9  ;;  %215 = vmatpush.bf16.msk.msra.mxu1 %vm198_vm5, %v314_v9  ;;  %vm206_vm1 = vmpackc.low %vm64_vm0, %vm63_vm15  ;;  %vm59_vm5 = vcmp.le.s32.totalorder %v41_v1, %v58_v2 }
  0x16   :  { %v119_v23 = vunpack.c.l.bf16 %v118_v21  ;;  %vm208_vm4 = vmpackc.low %vm62_vm3, %vm61_vm2 }
  0x17   :  { %vm210_vm7 = vmpackc.low %vm60_vm6, %vm59_vm5 }
  0x18   :  { %v120_v24 = vsub.f32 %v117_v18, %v119_v23 }
  0x19   :  { %201 = vmatpush.bf16.msk.msra.mxu0 %vm200_vm8, %v314_v9  ;;  %217 = vmatpush.bf16.msk.msra.mxu1 %vm200_vm8, %v314_v9 }
  0x1a   :  { %v121_v25 = vpack.c.bf16 %v120_v24, %v120_v24 }
  0x1d   :  { %203 = vmatpush.bf16.msk.msra.mxu0 %vm202_vm11, %v314_v9  ;;  %219 = vmatpush.bf16.msk.msra.mxu1 %vm202_vm11, %v314_v9 }
  0x21   :  { %205 = vmatpush.bf16.msk.msra.mxu0 %vm204_vm14, %v314_v9  ;;  %221 = vmatpush.bf16.msk.msra.mxu1 %vm204_vm14, %v314_v9 }
  0x25   :  { %207 = vmatpush.bf16.msk.msra.mxu0 %vm206_vm1, %v314_v9  ;;  %223 = vmatpush.bf16.msk.msra.mxu1 %vm206_vm1, %v314_v9 }
  0x29   :  { %209 = vmatpush.bf16.msk.msra.mxu0 %vm208_vm4, %v314_v9  ;;  %225 = vmatpush.bf16.msk.msra.mxu1 %vm208_vm4, %v314_v9 }
  0x2d   :  { %211 = vmatpush.bf16.msk.msra.mxu0 %vm210_vm7, %v314_v9  ;;  %227 = vmatpush.bf16.msk.msra.mxu1 %vm210_vm7, %v314_v9 }
  0x30   :  { %130 = vmatmul.bf16.vlgmr.msra.gmra.mxu0 %v121_v25  ;;  %143 = vmatmul.bf16.vlgmr.msra.gmra.mxu1 %v118_v21 }
  0xad   :  { %v131_v26 = vpop.f32.mrf.mxu0  ;;  %v144_v27 = vpop.f32.mrf.mxu1 }
  0xae   :  { %v145_v28 = vadd.f32 %v144_v27, %v131_v26 }
  0xb0   :  { %v149_v29 = vmul.f32 %v145_v28, %v145_v28 }
  0xb2   :  { %151 = vadd.xlane.f32.xlu0 %v149_v29 }
  0xb5   :  { %v133_v30 = vpop.f32.mrf.mxu0  ;;  %v146_v31 = vpop.f32.mrf.mxu1 }
 0x125   :  { %v152_v32 = vpop.xlane.xlu0 %151 }
 0x126   :  { %v153_v33 = vrot.slane %v152_v32, 4 }
 0x128   :  { %v154_v34 = vadd.f32 %v153_v33, %v152_v32 }
 0x12a   :  { %v155_v35 = vrot.slane %v154_v34, 2 }
 0x12c   :  { %v156_v36 = vadd.f32 %v155_v35, %v154_v34 }
 0x12e   :  { %v157_v37 = vrot.slane %v156_v36, 1 }
 0x130   :  { %v158_v38 = vadd.f32 %v157_v37, %v156_v36 }
 0x132   :  { %228 = vpush %v158_v38 }
 0x163   :  { %s229_s22 = spop %228 }
 0x164   :  { %v160_v39 = vstv %s229_s22 }
 0x165   :  { %161 = vst [vmem:[#allocation7] sm:$0xff] %v160_v39 }
 0x166   :  { %172 = dma.vmem_to_hbm [thread:$0]  %s168_s1, 128, %s170_s21, [#allocation4]  }
 0x167   :  { %310 = dma.done.wait [#allocation4], 128  }
 0x168   :  { %311 = vsyncadd [#allocation4], 4294967168 }
 0x169   :  { %177 = vsyncpa [#allocation3], 1 }
 0x16a   :  { %178 = vsyncpa [#allocation6], 1 }
 0x16b   :  { %179 = vsyncpa [#allocation4], 1 }

</bundles_post_ra>
